<compile_context>
chip_gen: v7x
topology: tpu7x:2x2x1
jax: 0.10.0
libtpu: 0.0.40
codegen_flags: <defaults>
</compile_context>

<pallas_src>
import functools
import math

import jax
import jax.numpy as jnp
from jax.experimental import pallas as pl
from jax.experimental.pallas import tpu as pltpu


class Configuration:
    """Minimal stand-in for the project's Configuration object (unused by OrientationLoss)."""
    pass


_LANES = 128        # vreg lane width (last dim)
_ACC_SUBLANES = 8   # f32 accumulator sublane count


def _round_up(x, m):
    return (x + m - 1) // m * m


def _sublane_multiple(dtype):
    """Min second-to-last tile multiple for this dtype (8/16/32 for 4/2/1-byte)."""
    itemsize = jnp.dtype(dtype).itemsize
    return max(8, 32 // itemsize)


def _mse_partial_kernel(a_ref, b_ref, acc_ref, *, steps, block_rows, valid_rows,
                        needs_mask):
    """Accumulate sum((a-b)^2) of one (block_rows, 128) tile into an (8,128) partial-sum block.

    acc_ref is the (1, 8, 128) output block for this core; it stays VMEM-resident
    across the inner ("arbitrary") grid axis and is written back to HBM once.
    """
    i = pl.program_id(0)   # core / stream shard
    k = pl.program_id(1)   # reduction step within the shard

    @pl.when(k == 0)
    def _init():
        acc_ref[...] = jnp.zeros_like(acc_ref)

    d = a_ref[...].astype(jnp.float32) - b_ref[...].astype(jnp.float32)
    sq = d * d

    if needs_mask:
        # Logical (unclamped) start row of this block; rows at/after valid_rows
        # hold garbage (ragged last block / clamped duplicate block) -> zero them.
        start_row = (i * steps + k) * block_rows
        local_row = jax.lax.broadcasted_iota(jnp.int32, sq.shape, 0)
        sq = jnp.where(start_row + local_row < valid_rows, sq, 0.0)

    # Fold (block_rows, 128) -> (8, 128) with sublane-aligned VALU adds
    # (no cross-lane XLU work anywhere in the kernel).
    acc_ref[...] += jnp.sum(sq.reshape(-1, _ACC_SUBLANES, _LANES), axis=0)[None]


def mse_loss_mean(a, b, *, max_block_rows=2048, small_n_threshold=1024):
    """Pallas-backed F.mse_loss(a, b, reduction='mean')."""
    assert a.shape == b.shape, (a.shape, b.shape)
    n = math.prod(a.shape)

    # Small-input fast path: fixed pallas_call overhead dominates for tiny
    # tensors; XLA fuses the elementwise + reduce.  (Threshold kept low so the
    # demo shapes below still exercise the Pallas path; raise for production.)
    if n < small_n_threshold:
        d = a.astype(jnp.float32) - b.astype(jnp.float32)
        return jnp.mean(d * d)

    sublane = max(_sublane_multiple(a.dtype), _sublane_multiple(b.dtype))

    a_flat = a.reshape(-1)
    b_flat = b.reshape(-1)
    if n % _LANES:
        # Rare fallback: pad only the <128-element ragged tail so the flat
        # buffer reshapes to whole 128-lane rows; padded zeros contribute 0.
        pad = _LANES - (n % _LANES)
        a_flat = jnp.pad(a_flat, (0, pad))
        b_flat = jnp.pad(b_flat, (0, pad))
    rows = a_flat.shape[0] // _LANES
    a2d = a_flat.reshape(rows, _LANES)   # contiguous reshape — no HBM copy
    b2d = b_flat.reshape(rows, _LANES)

    # Streaming tile: biggest dtype-legal block up to max_block_rows.
    # Footprint: 2 inputs x 2 buffers x block_rows x 128 x itemsize
    # (= 4 MiB at 2048 rows f32), safe on v7x's 64 MiB VMEM.
    block_rows = min(_round_up(max_block_rows, sublane), _round_up(rows, sublane))
    num_blocks = pl.cdiv(rows, block_rows)

    # Shard the row-tile stream across 2 TensorCores (v7x); on single-TC chips
    # the leading axis is just a 2-iteration loop.
    num_cores = 2 if num_blocks >= 2 else 1
    steps = pl.cdiv(num_blocks, num_cores)
    needs_mask = (num_cores * steps * block_rows) != rows

    def row_block_map(i, k):
        # Clamp so a logically-out-of-range block (odd block count) re-reads the
        # last valid block; its contribution is zeroed by the in-kernel mask.
        return (jnp.minimum(i * steps + k, num_blocks - 1), 0)

    kernel = functools.partial(
        _mse_partial_kernel,
        steps=steps,
        block_rows=block_rows,
        valid_rows=rows,
        needs_mask=needs_mask,
    )

    partials = pl.pallas_call(
        kernel,
        out_shape=jax.ShapeDtypeStruct((num_cores, _ACC_SUBLANES, _LANES),
                                       jnp.float32),
        grid=(num_cores, steps),
        in_specs=[
            pl.BlockSpec((block_rows, _LANES), row_block_map),
            pl.BlockSpec((block_rows, _LANES), row_block_map),
        ],
        # Same output block for every step of a given core -> VMEM-resident
        # accumulator; one tiny (8,128) HBM writeback per core.
        out_specs=pl.BlockSpec((1, _ACC_SUBLANES, _LANES), lambda i, k: (i, 0, 0)),
        compiler_params=pltpu.CompilerParams(
            dimension_semantics=("parallel", "arbitrary"),
            vmem_limit_bytes=32 * 1024 * 1024,
        ),
    )(a2d, b2d)

    # Tiny finalize: reduce the (num_cores, 8, 128) partial sums and scale by
    # 1/N (true element count — padding/masked rows contributed exactly 0).
    return jnp.sum(partials) * jnp.float32(1.0 / n)


class OrientationLoss:
    """Pallas-backed forward of the PyTorch OrientationLoss module."""

    def __init__(self, cfg: Configuration = None):
        self.cfg = cfg

    def __call__(self, orientation, orientation_tgt):
        return mse_loss_mean(orientation, orientation_tgt)


def _reference(orientation, orientation_tgt):
    """Pure-JAX reference of F.mse_loss(..., reduction='mean')."""
    d = orientation.astype(jnp.float32) - orientation_tgt.astype(jnp.float32)
    return jnp.mean(d * d)


if __name__ == "__main__":
    cfg = Configuration()
    loss_fn = OrientationLoss(cfg)

    key = jax.random.PRNGKey(0)
    k1, k2, k3, k4 = jax.random.split(key, 4)

    # Small shape implied by the module (B, C, H, W): single-block Pallas path.
    B, C, H, W = 2, 4, 16, 16
    orientation = jax.random.normal(k1, (B, C, H, W), dtype=jnp.float32)
    orientation_tgt = jax.random.normal(k2, (B, C, H, W), dtype=jnp.float32)

    loss = jax.block_until_ready(loss_fn(orientation, orientation_tgt))
    ref = jax.block_until_ready(_reference(orientation, orientation_tgt))
    assert jnp.allclose(loss, ref, rtol=1e-5, atol=1e-5), (loss, ref)

    # Larger shape: exercises the multi-block grid, the 2-way "parallel" stream
    # split and the in-kernel ragged-tail mask.
    big = jax.random.normal(k3, (2, 8, 120, 160), dtype=jnp.float32)
    big_tgt = jax.random.normal(k4, (2, 8, 120, 160), dtype=jnp.float32)
    loss2 = jax.block_until_ready(loss_fn(big, big_tgt))
    ref2 = jax.block_until_ready(_reference(big, big_tgt))
    assert jnp.allclose(loss2, ref2, rtol=1e-5, atol=1e-5), (loss2, ref2)

    print("KERNEL_OK")
</pallas_src>

<mosaic_0001>
module attributes {stable_mosaic.version = 11 : i64} {
  func.func @_mse_partial_kernel(%arg0: i32, %arg1: i32, %arg2: memref<16x128xf32, #tpu.memory_space<vmem>>, %arg3: memref<16x128xf32, #tpu.memory_space<vmem>>, %arg4: memref<1x8x128xf32, #tpu.memory_space<vmem>>) attributes {dimension_semantics = [#tpu.dimension_semantics<parallel>, #tpu.dimension_semantics<arbitrary>], iteration_bounds = array<i64: 1, 1>, scalar_prefetch = 0 : i64, scratch_operands = 0 : i64, tpu.core_type = #tpu.core_type<tc>, window_params = [{transform_indices = @transform_0, window_bounds = array<i64: 16, 128>}, {transform_indices = @transform_1, window_bounds = array<i64: 16, 128>}, {transform_indices = @transform_2, window_bounds = array<i64: 1, 8, 128>}]} {
    %c0_i32 = arith.constant 0 : i32
    %0 = arith.cmpi eq, %arg1, %c0_i32 : i32
    %1 = arith.extui %0 : i1 to i32
    %c0_i32_0 = arith.constant 0 : i32
    %2 = arith.cmpi ne, %1, %c0_i32_0 : i32
    scf.if %2 {
      %cst_10 = arith.constant 0.000000e+00 : f32
      %13 = vector.broadcast %cst_10 : f32 to vector<1x8x128xf32>
      %c0_11 = arith.constant 0 : index
      %c0_12 = arith.constant 0 : index
      %c0_13 = arith.constant 0 : index
      %14 = vector.load %arg4[%c0_11, %c0_12, %c0_13] : memref<1x8x128xf32, #tpu.memory_space<vmem>>, vector<1x8x128xf32>
      tpu.vector_store %arg4[%c0_11, %c0_12, %c0_13], %13 {strides = array<i32>} : memref<1x8x128xf32, #tpu.memory_space<vmem>>, vector<1x8x128xf32>,
    } else {
    }
    %c0 = arith.constant 0 : index
    %c0_1 = arith.constant 0 : index
    %3 = vector.load %arg2[%c0, %c0_1] : memref<16x128xf32, #tpu.memory_space<vmem>>, vector<16x128xf32>
    %c0_2 = arith.constant 0 : index
    %c0_3 = arith.constant 0 : index
    %4 = vector.load %arg3[%c0_2, %c0_3] : memref<16x128xf32, #tpu.memory_space<vmem>>, vector<16x128xf32>
    %5 = arith.subf %3, %4 : vector<16x128xf32>
    %6 = arith.mulf %5, %5 : vector<16x128xf32>
    %c0_4 = arith.constant 0 : index
    %c0_5 = arith.constant 0 : index
    %c0_6 = arith.constant 0 : index
    %7 = vector.load %arg4[%c0_4, %c0_5, %c0_6] : memref<1x8x128xf32, #tpu.memory_space<vmem>>, vector<1x8x128xf32>
    %8 = vector.shape_cast %6 : vector<16x128xf32> to vector<2x8x128xf32>
    %cst = arith.constant dense<0.000000e+00> : vector<8x128xf32>
    %9 = vector.multi_reduction <add>, %8, %cst [0] : vector<2x8x128xf32> to vector<8x128xf32>
    %10 = vector.shape_cast %9 : vector<8x128xf32> to vector<1x8x128xf32>
    %11 = arith.addf %7, %10 : vector<1x8x128xf32>
    %c0_7 = arith.constant 0 : index
    %c0_8 = arith.constant 0 : index
    %c0_9 = arith.constant 0 : index
    %12 = vector.load %arg4[%c0_7, %c0_8, %c0_9] : memref<1x8x128xf32, #tpu.memory_space<vmem>>, vector<1x8x128xf32>
    tpu.vector_store %arg4[%c0_7, %c0_8, %c0_9], %11 {strides = array<i32>} : memref<1x8x128xf32, #tpu.memory_space<vmem>>, vector<1x8x128xf32>,
    return
  }
  func.func @transform_0(%arg0: i32, %arg1: i32) -> (i32, i32) {
    %c1_i32 = arith.constant 1 : i32
    %0 = arith.muli %arg0, %c1_i32 : i32
    %1 = arith.addi %0, %arg1 : i32
    %c0_i32 = arith.constant 0 : i32
    %2 = arith.minsi %1, %c0_i32 : i32
    %c0_i32_0 = arith.constant 0 : i32
    %c0_i32_1 = arith.constant 0 : i32
    return %2, %c0_i32_0 : i32, i32
  }
  func.func @transform_1(%arg0: i32, %arg1: i32) -> (i32, i32) {
    %c1_i32 = arith.constant 1 : i32
    %0 = arith.muli %arg0, %c1_i32 : i32
    %1 = arith.addi %0, %arg1 : i32
    %c0_i32 = arith.constant 0 : i32
    %2 = arith.minsi %1, %c0_i32 : i32
    %c0_i32_0 = arith.constant 0 : i32
    %c0_i32_1 = arith.constant 0 : i32
    return %2, %c0_i32_0 : i32, i32
  }
  func.func @transform_2(%arg0: i32, %arg1: i32) -> (i32, i32, i32) {
    %c0_i32 = arith.constant 0 : i32
    %c0_i32_0 = arith.constant 0 : i32
    %c0_i32_1 = arith.constant 0 : i32
    return %arg0, %c0_i32, %c0_i32_0 : i32, i32, i32
  }
}

</mosaic_0001>

<bundles_post_ra>
// kernel: tpu_custom_call.1
= control target key start
LH: loop header
LB: loop body
LE: loop exit
PB: predicated region body
PF: predicated region fallthrough
CT: control target
= control target key end

     0   :  { %7 = vsyncpa [#allocation3], 0  ;;  %s231_s0 = inlined_call_operand.hbm [shape: f32[16,128], index: 0, kind: input, shape index: {}]   ;;  %s232_s1 = inlined_call_operand.hbm [shape: f32[16,128], index: 1, kind: input, shape index: {}]   ;;  %s233_s2 = inlined_call_operand.hbm [shape: f32[1,8,128], index: 2, kind: output, shape index: {}]  }
   0x1   :  { %8 = vsyncpa [#allocation6], 0 }
   0x2   :  { %9 = vsyncpa [#allocation4], 0  ;;  %s175_s9 = smov [#allocation2]   ;;  %s103_s13 = scalar_lea.hbm %s231_s0, 256 }
   0x3   :  { %s21_s10 = sshll.u32 %s175_s9, 4  ;;  %p104_p0 = scmp.ne.s32.totalorder %s231_s0, %s103_s13  ;;  %s22_s10 = int_to_ptr.vmem [resolvable:$true] %s21_s10 }
   0x4   :  { %p107_p1 = scmp.lt.u32.totalorder %s103_s13, %s231_s0 }
   0x6   :  { %p109_p2 = pnand %p107_p1, %p104_p0 }
   0x8   :  { %112 = shalt.err (!%p109_p2)
}
   0x9   :  { %s113_s18 = scalar_lea.vmem %s22_s10, 256  ;;  %p118_p4 = scmp.lt.s32.totalorder %s22_s10, %s22_s10 }
   0xa   :  { %p114_p3 = scmp.ne.s32.totalorder %s22_s10, %s113_s18  ;;  %p119_p5 = scmp.lt.s32.totalorder %s113_s18, %s113_s18 }
   0xc   :  { %p120_p6 = por %p119_p5, %p118_p4 }
   0xe   :  { %p121_p7 = pnand %p120_p6, %p114_p3 }
  0x10   :  { %124 = shalt.err (!%p121_p7)
}
  0x11   :  { %s176_s19 = smov 128   ;;  %s177_s20 = smov 8  }
  0x12   :  { %27 = dma.hbm_to_vmem [thread:$0]  %s231_s0, 256, %s22_s10, [#allocation3], %s176_s19, %s176_s19, %s177_s20  }
  0x13   :  { %s178_s23 = smov [#allocation5]   ;;  %s125_s27 = scalar_lea.hbm %s232_s1, 256 }
  0x14   :  { %s39_s24 = sshll.u32 %s178_s23, 4  ;;  %p126_p8 = scmp.ne.s32.totalorder %s232_s1, %s125_s27  ;;  %s40_s24 = int_to_ptr.vmem [resolvable:$true] %s39_s24 }
  0x15   :  { %p129_p9 = scmp.lt.u32.totalorder %s125_s27, %s232_s1 }
  0x17   :  { %p131_p10 = pnand %p129_p9, %p126_p8 }
  0x19   :  { %134 = shalt.err (!%p131_p10)
}
  0x1a   :  { %s135_s4 = scalar_lea.vmem %s40_s24, 256  ;;  %p140_p12 = scmp.lt.s32.totalorder %s40_s24, %s40_s24 }
  0x1b   :  { %p136_p11 = scmp.ne.s32.totalorder %s40_s24, %s135_s4  ;;  %p141_p13 = scmp.lt.s32.totalorder %s135_s4, %s135_s4 }
  0x1d   :  { %p142_p0 = por %p141_p13, %p140_p12 }
  0x1f   :  { %p143_p1 = pnand %p142_p0, %p136_p11 }
  0x21   :  { %146 = shalt.err (!%p143_p1)
}
  0x22   :  { %45 = dma.hbm_to_vmem [thread:$0]  %s232_s1, 256, %s40_s24, [#allocation6], %s176_s19, %s176_s19, %s177_s20  }
  0x23   :  { %169 = dma.done.wait [#allocation3], 256  }
  0x24   :  { %170 = vsyncadd [#allocation3], 4294967040 }
  0x25   :  { %171 = dma.done.wait [#allocation6], 256  }
  0x26   :  { %172 = vsyncadd [#allocation6], 4294967040  ;;  %v65_v0 = vld [vmem:[#allocation2] sm:$0xff]  ;;  %v66_v1 = vld [vmem:[#allocation2 + $0x8] sm:$0xff]  ;;  %s179_s6 = smov [#allocation7]  }
  0x27   :  { %v67_v2 = vld [vmem:[#allocation5] sm:$0xff]  ;;  %v68_v3 = vld [vmem:[#allocation5 + $0x8] sm:$0xff]  ;;  %s83_s7 = sshll.u32 %s179_s6, 4  ;;  %s84_s7 = int_to_ptr.vmem [resolvable:$true] %s83_s7 }
  0x28   :  { %v69_v4 = vsub.f32 %v65_v0, %v67_v2  ;;  %v70_v5 = vsub.f32 %v66_v1, %v68_v3  ;;  %s147_s8 = scalar_lea.vmem %s84_s7, 128  ;;  %p152_p3 = scmp.lt.s32.totalorder %s84_s7, %s84_s7 }
  0x29   :  { %p148_p2 = scmp.ne.s32.totalorder %s84_s7, %s147_s8  ;;  %p153_p4 = scmp.lt.s32.totalorder %s147_s8, %s147_s8 }
  0x2a   :  { %v71_v6 = vmul.f32 %v69_v4, %v69_v4  ;;  %v72_v7 = vmul.f32 %v70_v5, %v70_v5 }
  0x2b   :  { %p154_p5 = por %p153_p4, %p152_p3 }
  0x2c   :  { %v74_v8 = vadd.f32 %v72_v7, %v71_v6 }
  0x2d   :  { %p155_p6 = pnand %p154_p5, %p148_p2 }
  0x2e   :  { %76 = vst [vmem:[#allocation7] sm:$0xff] %v74_v8 }
  0x2f   :  { %158 = shalt.err (!%p155_p6)
}
  0x30   :  { %s159_s10 = scalar_lea.hbm %s233_s2, 128 }
  0x31   :  { %p160_p7 = scmp.ne.s32.totalorder %s233_s2, %s159_s10  ;;  %p163_p8 = scmp.lt.u32.totalorder %s159_s10, %s233_s2 }
  0x33   :  { %p165_p9 = pnand %p163_p8, %p160_p7 }
  0x35   :  { %168 = shalt.err (!%p165_p9)
}
  0x36   :  { %86 = dma.vmem_to_hbm [thread:$0]  %s84_s7, 128, %s233_s2, [#allocation4]  }
  0x37   :  { %173 = dma.done.wait [#allocation4], 128  }
  0x38   :  { %174 = vsyncadd [#allocation4], 4294967168 }
  0x39   :  { %90 = vsyncpa [#allocation3], 1 }
  0x3a   :  { %91 = vsyncpa [#allocation6], 1 }
  0x3b   :  { %92 = vsyncpa [#allocation4], 1 }

</bundles_post_ra>
